<compile_context>
chip_gen: v6e
topology: v6e:2x2x1
jax: 0.10.0
libtpu: 0.0.40
codegen_flags: <defaults>
</compile_context>

<pallas_src>
import itertools
from functools import partial

import numpy as np
import jax
import jax.numpy as jnp
from jax.experimental import pallas as pl
from jax.experimental.pallas import tpu as pltpu

_PERM = [0, 2, 4, 6, 1, 3, 5, 7]        # column reorder used by get_packed_abs_grid
_PERM_INV = [0, 4, 1, 5, 2, 6, 3, 7]    # its inverse
_SCALE = 32.0
_OPT_RESID_SCALE = 2.04


# ----------------------------------------------------------------------------
# Codebook construction (numpy ports of get_norm12 / get_abs_grid /
# get_packed_abs_grid / get_e81bgrid).
# ----------------------------------------------------------------------------
def get_norm12_np():
    rows = [
        [3, 1, 1, 1, 3, 3, 3, 3], [1, 3, 1, 1, 3, 3, 3, 3], [1, 1, 3, 1, 3, 3, 3, 3],
        [1, 1, 1, 3, 3, 3, 3, 3], [3, 3, 3, 1, 3, 3, 1, 1], [3, 3, 3, 1, 3, 1, 3, 1],
        [3, 3, 3, 1, 1, 3, 3, 1], [3, 3, 3, 1, 3, 1, 1, 3], [3, 3, 3, 1, 1, 3, 1, 3],
        [3, 3, 3, 1, 1, 1, 3, 3], [3, 3, 1, 3, 3, 3, 1, 1], [3, 3, 1, 3, 3, 1, 3, 1],
        [3, 3, 1, 3, 1, 3, 3, 1], [3, 3, 1, 3, 3, 1, 1, 3], [3, 3, 1, 3, 1, 3, 1, 3],
        [3, 3, 1, 3, 1, 1, 3, 3], [3, 1, 3, 3, 3, 3, 1, 1], [3, 1, 3, 3, 3, 1, 3, 1],
        [3, 1, 3, 3, 1, 3, 3, 1], [3, 1, 3, 3, 3, 1, 1, 3], [3, 1, 3, 3, 1, 3, 1, 3],
        [1, 3, 3, 3, 1, 1, 3, 3], [1, 3, 3, 3, 3, 3, 1, 1], [1, 3, 3, 3, 3, 1, 3, 1],
        [1, 3, 3, 3, 1, 3, 3, 1], [1, 3, 3, 3, 3, 1, 1, 3], [1, 3, 3, 3, 1, 3, 1, 3],
        [1, 1, 3, 3, 1, 3, 3, 3], [3, 3, 1, 1, 3, 3, 3, 1],
    ]
    return np.asarray(rows, dtype=np.float64) / 2.0


def get_abs_grid_np():
    cand = np.array(list(itertools.product((0.5, 1.5, 2.5, 3.5), repeat=8)),
                    dtype=np.float64)
    d8abs = cand[(cand ** 2).sum(1) <= 10.0]
    grid = np.concatenate([d8abs, get_norm12_np()], axis=0)
    assert grid.shape == (256, 8)
    return grid


def get_packed_abs_grid_np(abs_grid):
    cba = abs_grid[:, _PERM].copy()
    rowsum = np.rint(cba.sum(1)).astype(np.int64)
    cba[:, 7] = cba[:, 7] * (1 - 2 * (rowsum % 2))
    nib = np.rint(cba * 2 + 8).astype(np.int64)
    acc = np.zeros(cba.shape[0], dtype=np.int64)
    for i in range(8):
        acc = acc | (nib[:, i] << (4 * i))
    return (acc & 0xFFFFFFFF).astype(np.uint32).view(np.int32)   # int32[256] buffer


def get_e81bgrid_np():
    int_rows = [tuple([0] * 8)]
    for i in range(8):
        for j in range(i + 1, 8):
            for vi in (-1, 1):
                for vj in (-1, 1):
                    v = [0] * 8
                    v[i], v[j] = vi, vj
                    int_rows.append(tuple(v))
    int_rows = sorted(int_rows)
    half = np.array(list(itertools.product((-0.5, 0.5), repeat=8)), dtype=np.float64)
    half = half[(half.sum(1) % 2) == 0]
    norm4 = []
    for k in range(8):
        v = [0] * 8; v[k] = 2; norm4.append(v)
    for k in range(7):
        v = [0] * 8; v[k] = -2; norm4.append(v)
    grid = np.concatenate([np.array(int_rows, dtype=np.float64), half,
                           np.array(norm4, dtype=np.float64)], axis=0)
    assert grid.shape == (256, 8)
    return grid


def abs_table_from_packed(packed_i32):
    """grid_packed_abs nibbles -> (256, 8) f32 table in ORIGINAL coordinate order;
    column 7 keeps the packed sign flag (negative <=> abs-row-sum is odd)."""
    p = packed_i32.astype(np.int64)
    nib = np.stack([(p >> (4 * j)) & 0xF for j in range(8)], axis=1)
    vals = (nib.astype(np.float64) - 8.0) / 2.0
    return vals[:, _PERM_INV].astype(np.float32)


def sylvester_hadamard(n):
    assert n & (n - 1) == 0
    H = np.array([[1.0]], dtype=np.float64)
    while H.shape[0] < n:
        H = np.block([[H, H], [H, -H]])
    return H


# ----------------------------------------------------------------------------
# Packed-index format (maybe_pack_idxs) and its inverse: vectorized uint64 numpy,
# plus the kernel-friendly transposed int32 repack.
# ----------------------------------------------------------------------------
def pack_e8p_np(idxs):
    m, n8 = idxs.shape
    a = idxs.astype(np.uint64).reshape(m // 2, 2, n8 // 2, 2).transpose(0, 2, 1, 3)
    abs32 = ((a[:, :, 0, 0] >> np.uint64(8))
             | ((a[:, :, 1, 0] >> np.uint64(8)) << np.uint64(8))
             | ((a[:, :, 0, 1] >> np.uint64(8)) << np.uint64(16))
             | ((a[:, :, 1, 1] >> np.uint64(8)) << np.uint64(24)))
    sign32 = np.zeros((m // 2, n8 // 2), dtype=np.uint64)
    for i in range(4):
        wt = a[:, :, i % 2, i // 2]
        for j in range(8):
            sign32 |= ((wt >> np.uint64(j)) & np.uint64(1)) << np.uint64(4 * j + i)
    out = (sign32 << np.uint64(32)) | abs32
    out = out.reshape(m // 16, 8, n8 // 8, 4).transpose(0, 2, 1, 3)
    return np.ascontiguousarray(out).reshape(m, n8 // 4)


def unpack_e8p_np(packed, m, n8):
    t = np.ascontiguousarray(
        packed.astype(np.uint64).reshape(m // 16, n8 // 8, 8, 4).transpose(0, 2, 1, 3)
    ).reshape(m // 2, n8 // 2)
    sign32 = (t >> np.uint64(32)).astype(np.int64)
    abs32 = (t & np.uint64(0xFFFFFFFF)).astype(np.int64)
    codes = np.zeros((m // 2, n8 // 2, 2, 2), dtype=np.int64)
    for i in range(4):
        sub, col = i % 2, i // 2
        abs_byte = (abs32 >> (8 * i)) & 0xFF
        wt = np.zeros((m // 2, n8 // 2), dtype=np.int64)
        for j in range(8):
            wt |= ((sign32 >> (4 * j + i)) & 1) << j
        codes[:, :, sub, col] = (abs_byte << 8) | wt
    return np.ascontiguousarray(codes.transpose(0, 2, 1, 3)).reshape(m, n8)


def pack_e81b_np(idxs):
    a = idxs.astype(np.uint64)
    accum = a[:, 0::8].copy()
    for i in range(1, 8):
        accum |= a[:, i::8] << np.uint64(8 * i)
    return accum


def unpack_e81b_np(packed, m, n8):
    p = packed.astype(np.uint64)
    out = np.zeros((m, n8), dtype=np.int64)
    for i in range(8):
        out[:, i::8] = ((p >> np.uint64(8 * i)) & np.uint64(0xFF)).astype(np.int64)
    return out


def repack_codes_for_kernel(codes16, rcodes, m, n):
    """Dense per-group codes -> transposed, bit-packed int32 arrays for the kernel.
       e8p_T : (n/16, m) int32, two 16-bit E8P codes per word (groups 2c, 2c+1)
       e81b_T: (n/32, m) int32, four 8-bit E81B codes per word (groups 4c..4c+3)"""
    n8 = n // 8
    c = codes16.astype(np.uint32).reshape(m, n8 // 2, 2)
    e8p_words = (c[:, :, 0] | (c[:, :, 1] << np.uint32(16))).astype(np.uint32)
    e8p_T = np.ascontiguousarray(e8p_words.T).view(np.int32)
    r = rcodes.astype(np.uint32).reshape(m, n8 // 4, 4)
    e81b_words = (r[:, :, 0] | (r[:, :, 1] << np.uint32(8))
                  | (r[:, :, 2] << np.uint32(16)) | (r[:, :, 3] << np.uint32(24))).astype(np.uint32)
    e81b_T = np.ascontiguousarray(e81b_words.T).view(np.int32)
    return e8p_T, e81b_T


def _fingerprint(arr):
    # TODO(synk): strided-sample fingerprint; a hash collision would reuse a stale cache
    # entry -- swap in a real content hash / explicit user key if that matters.
    a = np.ascontiguousarray(np.asarray(arr))
    flat = a.reshape(-1)
    step = max(1, flat.size // 4096)
    return (a.shape, str(a.dtype), hash(flat[::step].tobytes()))


def _vmem_cap(nbytes):
    # modest, generation-safe scoped-VMEM request (v7x has only 64 MiB per TensorCore).
    return int(min(max(nbytes + (4 << 20), 16 << 20), 48 << 20))


# ----------------------------------------------------------------------------
# Pallas kernels
# ----------------------------------------------------------------------------
def _pre_hadamard_kernel(x_ref, hn_ref, o_ref):
    # o = ((x * SU) @ H_left) / 32 ; SU and 1/32 folded into hn host-side, x already bf16.
    # TODO(synk): reference rounds activations to fp16; TPU-native bf16 rounding is used.
    o_ref[...] = jnp.dot(x_ref[...], hn_ref[...],
                         preferred_element_type=jnp.float32).astype(jnp.bfloat16)


def _post_hadamard_kernel(z_ref, hm_ref, o_ref):
    # o = (z @ H_right) * SV * 32 ; SV*32 folded into hm host-side, z is bf16.
    o_ref[...] = jnp.dot(z_ref[...], hm_ref[...], preferred_element_type=jnp.float32)


def _decode_matmul_kernel(x_ref, e8p_ref, e81b_ref, abst_ref, e81bt_ref, o_ref,
                          wt_ref, acc_ref, *, inv_resid_scale):
    """Per grid point (bi, mi, ki): decode a (TK, TM) tile of W^T into bf16 VMEM scratch
    and accumulate acc[TB, TM] += x16[TB, ki*TK:ki*TK+TK] @ Wt (bf16 MXU, f32 accum);
    emit the bf16 output tile at the last ki."""
    ki = pl.program_id(2)
    nk = pl.num_programs(2)
    TK, TM = wt_ref.shape
    pairs = TK // 16                      # two 8-row codebook groups per loop iteration

    # constants hoisted out of the decode loop
    kio = jax.lax.broadcasted_iota(jnp.int32, (8, 1), 0)      # in-group position k
    bitpos = 4 * (kio & 1) + (kio >> 1)                       # inverse of [0,2,4,6,1,3,5,7]
    col0 = (kio == 0).astype(jnp.int32)
    col7 = (kio == 7).astype(jnp.int32)
    iota256 = jax.lax.broadcasted_iota(jnp.int32, (256, TM), 0)
    abst = abst_ref[...]        # (8, 256) bf16 : abs_table^T (col 7 sign-flagged), exact values
    e81bt = e81bt_ref[...]      # (8, 256) bf16 : e81b_grid^T (unscaled), exact values

    def decode_pair(p, carry):
        # one e8p int32 word = the two 16-bit codes of groups 2p, 2p+1
        word = e8p_ref[pl.ds(p, 1), :]                            # (1, TM) int32
        # one e81b int32 word = four 8-bit codes of groups 4*(p//2)..4*(p//2)+3
        rword = e81b_ref[pl.ds(p >> 1, 1), :]                     # (1, TM) int32
        rsh = 16 * (p & 1)

        slabs = []
        for sub in (0, 1):                                        # static 2x unroll
            code = (word >> (16 * sub)) & 0xFFFF
            abs_idx = code >> 8
            sbyte = code & 0xFF
            one_hot = (iota256 == abs_idx).astype(jnp.bfloat16)   # (256, TM) bf16
            a = jnp.dot(abst, one_hot, preferred_element_type=jnp.float32)   # (8, TM) f32
            odd = (a[7:8, :] < 0.0).astype(jnp.int32)             # abs-row-sum parity flag
            pb = sbyte ^ (sbyte >> 4)                             # popcount(sbyte) & 1
            pb = pb ^ (pb >> 2)
            parity = (pb ^ (pb >> 1)) & 1                         # (1, TM)
            t = (sbyte >> bitpos) & 1                             # sign bits, original order
            t = t ^ (parity * col0) ^ (odd * col7)
            sign = (1 - 2 * t).astype(jnp.float32)
            shift = (1 - 2 * parity).astype(jnp.float32) * 0.25
            v = jnp.abs(a) * sign + shift                         # decoded E8P values (8, TM)

            rcode = (rword >> (rsh + 8 * sub)) & 0xFF
            r_hot = (iota256 == rcode).astype(jnp.bfloat16)
            r = jnp.dot(e81bt, r_hot, preferred_element_type=jnp.float32)
            # 1/resid_scale applied in f32 AFTER the gather (not folded into a bf16 table)
            slabs.append(v + r * inv_resid_scale)

        # aligned (16, TM) bf16 store into the W^T tile (matches bf16 (16,128) tiling)
        w_pair = jnp.concatenate(slabs, axis=0).astype(jnp.bfloat16)
        wt_ref[pl.ds(pl.multiple_of(16 * p, 16), 16), :] = w_pair
        return carry

    jax.lax.fori_loop(0, pairs, decode_pair, 0, unroll=2)

    @pl.when(ki == 0)
    def _():
        acc_ref[...] = jnp.zeros_like(acc_ref)

    xk = x_ref[:, pl.ds(pl.multiple_of(ki * TK, TK), TK)]          # resident x16 slice
    acc_ref[...] += jnp.dot(xk, wt_ref[...], preferred_element_type=jnp.float32)

    @pl.when(ki == nk - 1)
    def _():
        o_ref[...] = acc_ref[...].astype(o_ref.dtype)


# ----------------------------------------------------------------------------
# Module equivalent
# ----------------------------------------------------------------------------
class QuantizedE8P12RVQ3BLinearPallas:
    def __init__(self):
        self.scale = _SCALE
        self.opt_resid_scale = _OPT_RESID_SCALE
        abs_grid = get_abs_grid_np()
        self.grid_packed_abs = get_packed_abs_grid_np(abs_grid)          # int32[256] buffer
        self.e81b_grid = get_e81bgrid_np().astype(np.float16)            # fp16 buffer (exact)
        self._abs_table = abs_table_from_packed(self.grid_packed_abs)    # (256, 8) f32 (numpy ref)
        self._e81b_f32 = self.e81b_grid.astype(np.float32)               # (256, 8) f32 (numpy ref)
        # device codebook tables for the kernel, bf16 (all entries exact), uploaded once
        self._abs_tableT_dev = jnp.asarray(
            np.ascontiguousarray(self._abs_table.T), jnp.bfloat16)       # (8, 256)
        self._e81b_tableT_dev = jnp.asarray(
            np.ascontiguousarray(self._e81b_f32.T), jnp.bfloat16)        # (8, 256)
        self._code_cache = {}
        self._const_cache = {}

    def maybe_unpack_idxs(self, idxs):
        split = idxs.shape[-1] * 2 // 3
        return idxs[:, :split], idxs[:, split:]

    def _prepare_codes(self, Qidxs, m, n):
        """One-time host repack of the packed int64 words into the kernel's dense,
        transposed int32 layout (content-fingerprint keyed cache; off the hot path)."""
        Q = np.asarray(Qidxs)
        key = (m, n) + _fingerprint(Q)
        hit = self._code_cache.get(key)
        if hit is None:
            init_packed, resid_packed = self.maybe_unpack_idxs(Q)
            codes16 = unpack_e8p_np(init_packed, m, n // 8)
            rcodes = unpack_e81b_np(resid_packed, m, n // 8)
            e8p_T, e81b_T = repack_codes_for_kernel(codes16, rcodes, m, n)
            hit = (jnp.asarray(e8p_T), jnp.asarray(e81b_T))
            self._code_cache[key] = hit
        return hit

    def _prepare_hadamards(self, SU, SV, had_left, had_right):
        """Fold SU and 1/scale into H_left, SV*scale into H_right (bf16) once and cache
        the device arrays (no per-call float64 rebuild / H2D re-upload)."""
        key = (_fingerprint(SU), _fingerprint(SV),
               _fingerprint(had_left), _fingerprint(had_right))
        hit = self._const_cache.get(key)
        if hit is None:
            hn_s = jnp.asarray(np.asarray(had_left, np.float64)
                               * np.asarray(SU, np.float64)[:, None] / self.scale,
                               jnp.bfloat16)
            hm_s = jnp.asarray(np.asarray(had_right, np.float64)
                               * (np.asarray(SV, np.float64) * self.scale)[None, :],
                               jnp.bfloat16)
            hit = (hn_s, hm_s)
            self._const_cache[key] = hit
        return hit

    def forward(self, x, Qidxs, SU, SV, had_left, had_right, K_left, K_right,
                rank=-1, A=None, B=None, rescale_WH=False, scaleWH=None,
                resid_scale_override=-1.0, train_mode=False):
        assert K_left == 1 and K_right == 1, "synthetic setup uses K=1 Hadamards"
        assert not rescale_WH and rank <= 0 and not train_mode
        # TODO(synk): rank>0 (LoRA add), rescale_WH and train_mode branches are plain JAX
        # ops and not exercised here; the fused single-row CUDA matvec path is subsumed
        # by the general tiled decode+GEMM path below.
        n, m = int(SU.shape[0]), int(SV.shape[0])
        orig_shape = x.shape
        resid_scale = resid_scale_override if resid_scale_override > 0 else self.opt_resid_scale

        # ---- tile selection --------------------------------------------------
        # TODO(synk): pad n/m when not multiples of 256/128 instead of asserting.
        assert n % 256 == 0 and m % 128 == 0, "n must be a multiple of 256, m of 128"
        TK = 512 if n % 512 == 0 else 256
        TM = 256 if (m % 256 == 0 and m >= 512) else 128   # keep m//TM >= 2 for v7x 2 TCs
        TN = 256 if n % 256 == 0 else 128
        TNm = 256 if m % 256 == 0 else 128

        # activations to bf16 once (not per tile), pad batch to a sublane-friendly size
        xb = jnp.asarray(x).reshape(-1, n).astype(jnp.bfloat16)
        Bt = xb.shape[0]
        if Bt <= 256:
            Bt_pad = max(8, -(-Bt // 8) * 8)
            TB = Bt_pad
        else:
            Bt_pad = -(-Bt // 128) * 128
            TB = 128
        if Bt_pad != Bt:
            xb = jnp.pad(xb, ((0, Bt_pad - Bt), (0, 0)))

        e8p_T, e81b_T = self._prepare_codes(Qidxs, m, n)
        hn_s, hm_s = self._prepare_hadamards(SU, SV, had_left, had_right)

        # --- 1. pre-Hadamard: x16 = bf16((x*SU) @ H_left / 32) ----------------
        # TODO(synk): an in-kernel FWHT butterfly would remove the O(n^2) H stream.
        x16 = pl.pallas_call(
            _pre_hadamard_kernel,
            out_shape=jax.ShapeDtypeStruct((Bt_pad, n), jnp.bfloat16),
            grid=(Bt_pad // TB, n // TN),
            in_specs=[pl.BlockSpec((TB, n), lambda bi, j: (bi, 0)),
                      pl.BlockSpec((n, TN), lambda bi, j: (0, j))],
            out_specs=pl.BlockSpec((TB, TN), lambda bi, j: (bi, j)),
            compiler_params=pltpu.CompilerParams(
                dimension_semantics=("parallel", "parallel"),
                vmem_limit_bytes=_vmem_cap(
                    2 * TB * n * 2 + 2 * n * TN * 2 + 2 * TB * TN * 2)),
        )(xb, hn_s)

        # --- 2. decode + GEMM: z = bf16(x16 @ W^T) ----------------------------
        z = pl.pallas_call(
            partial(_decode_matmul_kernel, inv_resid_scale=float(1.0 / resid_scale)),
            out_shape=jax.ShapeDtypeStruct((Bt_pad, m), jnp.bfloat16),
            grid=(Bt_pad // TB, m // TM, n // TK),
            in_specs=[pl.BlockSpec((TB, n), lambda bi, mi, ki: (bi, 0)),         # x16 resident
                      pl.BlockSpec((TK // 16, TM), lambda bi, mi, ki: (ki, mi)),  # E8P codes
                      pl.BlockSpec((TK // 32, TM), lambda bi, mi, ki: (ki, mi)),  # E81B codes
                      pl.BlockSpec((8, 256), lambda bi, mi, ki: (0, 0)),          # abs table^T
                      pl.BlockSpec((8, 256), lambda bi, mi, ki: (0, 0))],         # e81b table^T
            out_specs=pl.BlockSpec((TB, TM), lambda bi, mi, ki: (bi, mi)),
            scratch_shapes=[pltpu.VMEM((TK, TM), jnp.bfloat16),     # W^T tile (bf16)
                            pltpu.VMEM((TB, TM), jnp.float32)],     # f32 accumulator
            compiler_params=pltpu.CompilerParams(
                dimension_semantics=("parallel", "parallel", "arbitrary"),
                vmem_limit_bytes=_vmem_cap(
                    2 * TB * n * 2 + 2 * (TK // 16) * TM * 4 + 2 * (TK // 32) * TM * 4
                    + 4 * 8 * 256 * 2 + 2 * TB * TM * 2 + TK * TM * 2 + TB * TM * 4)),
        )(x16, e8p_T, e81b_T, self._abs_tableT_dev, self._e81b_tableT_dev)

        # --- 3. post-Hadamard: out = (z @ H_right) * SV * 32 ------------------
        out = pl.pallas_call(
            _post_hadamard_kernel,
            out_shape=jax.ShapeDtypeStruct((Bt_pad, m), jnp.float32),
            grid=(Bt_pad // TB, m // TNm),
            in_specs=[pl.BlockSpec((TB, m), lambda bi, j: (bi, 0)),
                      pl.BlockSpec((m, TNm), lambda bi, j: (0, j))],
            out_specs=pl.BlockSpec((TB, TNm), lambda bi, j: (bi, j)),
            compiler_params=pltpu.CompilerParams(
                dimension_semantics=("parallel", "parallel"),
                vmem_limit_bytes=_vmem_cap(
                    2 * TB * m * 2 + 2 * m * TNm * 2 + 2 * TB * TNm * 4)),
        )(z, hm_s)

        out = out[:Bt]
        return out.reshape(*orig_shape[:-1], m)


# ----------------------------------------------------------------------------
# numpy reference (decode + full forward chain), used only for a sanity check
# ----------------------------------------------------------------------------
def reference_forward(x_np, Qidxs, SU, SV, Hn, Hm, layer, resid_scale):
    n, m = SU.shape[0], SV.shape[0]
    n8 = n // 8
    init_packed, resid_packed = layer.maybe_unpack_idxs(Qidxs)
    codes = unpack_e8p_np(init_packed, m, n8)
    rcodes = unpack_e81b_np(resid_packed, m, n8)
    a = layer._abs_table[codes >> 8].astype(np.float64)
    sbyte = codes & 0xFF
    odd = (a[..., 7] < 0).astype(np.int64)
    bits = (sbyte[..., None] >> np.arange(8)) & 1
    parity = bits.sum(-1) & 1
    t = (sbyte[..., None] >> np.asarray(_PERM_INV)) & 1
    t[..., 0] ^= parity
    t[..., 7] ^= odd
    W_dec = np.abs(a) * (1 - 2 * t) + ((1 - 2 * parity) * 0.25)[..., None]
    W = (W_dec + layer._e81b_f32[rcodes].astype(np.float64) / resid_scale).reshape(m, n)
    xf = x_np.reshape(-1, n).astype(np.float64) * SU
    x1 = (xf @ Hn) / _SCALE
    z = (x1 @ W.T) @ Hm
    return z * SV * _SCALE, W_dec.reshape(m, n)


if __name__ == "__main__":
    n, m = 512, 256
    n8 = n // 8
    abs_grid = get_abs_grid_np()
    layer = QuantizedE8P12RVQ3BLinearPallas()

    key = jax.random.PRNGKey(0)
    k_abs, k_t, k_p, k_res, k_su, k_sv, k_x = jax.random.split(key, 7)
    abs_idx = np.asarray(jax.random.randint(k_abs, (m, n8), 0, 256), dtype=np.int64)
    t_free = np.asarray(jax.random.randint(k_t, (m, n8, 7), 0, 2), dtype=np.int64)
    p_bit = np.asarray(jax.random.randint(k_p, (m, n8), 0, 2), dtype=np.int64)
    rcodes_true = np.asarray(jax.random.randint(k_res, (m, n8), 0, 256), dtype=np.int64)

    # build VALID E8P codes (sign-count parity matches abs-grid row parity)
    odd_abs = np.rint(abs_grid.sum(1)).astype(np.int64) % 2
    odd = odd_abs[abs_idx]
    t7 = (odd + t_free.sum(-1)) % 2
    t = np.concatenate([t_free, t7[..., None]], axis=-1)
    sm = t[..., np.asarray(_PERM)].copy()
    sm[..., 7] ^= odd
    sm[..., 0] ^= p_bit
    mask_idx = (sm << np.arange(8)).sum(-1)
    codes16 = (abs_idx << 8) | mask_idx

    Qidxs = np.concatenate([pack_e8p_np(codes16), pack_e81b_np(rcodes_true)], axis=1)

    SU = np.where(np.asarray(jax.random.bernoulli(k_su, 0.5, (n,))), 1.0, -1.0).astype(np.float32)
    SV = np.where(np.asarray(jax.random.bernoulli(k_sv, 0.5, (m,))), 1.0, -1.0).astype(np.float32)
    x = jax.random.normal(k_x, (2, 4, n), dtype=jnp.float32)   # input (..., n), 8 rows total

    Hn = (sylvester_hadamard(n) / np.sqrt(n)).astype(np.float32)
    Hm = (sylvester_hadamard(m) / np.sqrt(m)).astype(np.float32)

    out = layer.forward(x, Qidxs, SU, SV, Hn, Hm, 1, 1)
    out = jax.block_until_ready(out)

    ref, W_dec_ref = reference_forward(np.asarray(x), Qidxs, SU, SV, Hn, Hm,
                                       layer, _OPT_RESID_SCALE)
    expected_W = (abs_grid[abs_idx] * (1 - 2 * t)
                  + ((1 - 2 * p_bit) * 0.25)[..., None]).reshape(m, n)
    assert np.allclose(W_dec_ref, expected_W, atol=1e-5), "pack/unpack/decode round-trip failed"

    out_np = np.asarray(out, dtype=np.float64).reshape(-1, m)
    err = float(np.max(np.abs(out_np - ref)))
    tol = 3e-2 * (float(np.max(np.abs(ref))) + 1.0)
    assert out.shape == (2, 4, m) and np.isfinite(out_np).all() and err <= tol, \
        f"kernel/reference mismatch: {err} > {tol}"
    print("KERNEL_OK")
</pallas_src>

<mosaic_0001>
module attributes {stable_mosaic.version = 11 : i64} {
  func.func @_pre_hadamard_kernel(%arg0: i32, %arg1: i32, %arg2: memref<8x512xbf16, #tpu.memory_space<vmem>>, %arg3: memref<512x256xbf16, #tpu.memory_space<vmem>>, %arg4: memref<8x256xbf16, #tpu.memory_space<vmem>>) attributes {dimension_semantics = [#tpu.dimension_semantics<parallel>, #tpu.dimension_semantics<parallel>], iteration_bounds = array<i64: 1, 2>, scalar_prefetch = 0 : i64, scratch_operands = 0 : i64, tpu.core_type = #tpu.core_type<tc>, window_params = [{transform_indices = @transform_0, window_bounds = array<i64: 8, 512>}, {transform_indices = @transform_1, window_bounds = array<i64: 512, 256>}, {transform_indices = @transform_2, window_bounds = array<i64: 8, 256>}]} {
    %c0 = arith.constant 0 : index
    %c0_0 = arith.constant 0 : index
    %0 = vector.load %arg2[%c0, %c0_0] : memref<8x512xbf16, #tpu.memory_space<vmem>>, vector<8x512xbf16>
    %c0_1 = arith.constant 0 : index
    %c0_2 = arith.constant 0 : index
    %1 = vector.load %arg3[%c0_1, %c0_2] : memref<512x256xbf16, #tpu.memory_space<vmem>>, vector<512x256xbf16>
    %cst = arith.constant dense<0.000000e+00> : vector<8x256xf32>
    %2 = tpu.matmul %0, %1, %cst {dimension_numbers = #tpu.dot_dimension_numbers<[1], [0], [0], [1], [0, 0, 1, 1], [], []>} : vector<8x512xbf16>, vector<512x256xbf16>, vector<8x256xf32> -> vector<8x256xf32>
    %3 = arith.truncf %2 : vector<8x256xf32> to vector<8x256xbf16>
    %c0_3 = arith.constant 0 : index
    %c0_4 = arith.constant 0 : index
    %4 = vector.load %arg4[%c0_3, %c0_4] : memref<8x256xbf16, #tpu.memory_space<vmem>>, vector<8x256xbf16>
    tpu.vector_store %arg4[%c0_3, %c0_4], %3 {strides = array<i32>} : memref<8x256xbf16, #tpu.memory_space<vmem>>, vector<8x256xbf16>,
    return
  }
  func.func @transform_0(%arg0: i32, %arg1: i32) -> (i32, i32) {
    %c0_i32 = arith.constant 0 : i32
    %c0_i32_0 = arith.constant 0 : i32
    return %arg0, %c0_i32 : i32, i32
  }
  func.func @transform_1(%arg0: i32, %arg1: i32) -> (i32, i32) {
    %c0_i32 = arith.constant 0 : i32
    %c0_i32_0 = arith.constant 0 : i32
    return %c0_i32, %arg1 : i32, i32
  }
  func.func @transform_2(%arg0: i32, %arg1: i32) -> (i32, i32) {
    %c0_i32 = arith.constant 0 : i32
    return %arg0, %arg1 : i32, i32
  }
}

</mosaic_0001>

<bundles_post_ra>
// kernel: tpu_custom_call.1
= control target key start
LH: loop header
LB: loop body
LE: loop exit
PB: predicated region body
PF: predicated region fallthrough
CT: control target
= control target key end

     0   :  { %7 = vsyncpa [#allocation3], 0  ;;  %s1470_s0 = inlined_call_operand.hbm [shape: bf16[8,512], index: 0, kind: input, shape index: {}]   ;;  %s1471_s1 = inlined_call_operand.hbm [shape: bf16[512,512], index: 1, kind: input, shape index: {}]   ;;  %s1472_s2 = inlined_call_operand.hbm [shape: bf16[8,512], index: 2, kind: output, shape index: {}]  }
   0x1   :  { %8 = vsyncpa [#allocation6], 0 }
   0x2   :  { %10 = vsyncpa [#allocation6 + $0x1], 0 }
   0x3   :  { %11 = vsyncpa [#allocation4], 0 }
   0x4   :  { %13 = vsyncpa [#allocation4 + $0x1], 0  ;;  %s1228_s9 = smov 0   ;;  %s1230_s10 = smov 0  }
   0x5   :  { %s1232_s11 = smov 0   ;;  %s1234_s12 = smov 0  }
   0x6   :  { %s1236_s13 = smov 0   ;;  %s1238_s14 = smov 0  }
   0x7 LB: > { %s802_s15 = sadd.s32 4294967295, %s1205_s14   ;;  %s803_s16 = sadd.s32 4294967294, %s1205_s14   ;;  %s1205_s14 = sphi %s1238_s14, %s19_s14   ;;  %s1201_s13 = sphi %s1236_s13, %s1491_s13   ;;  %s1197_s12 = sphi %s1234_s12, %s1490_s12   ;;  %s1193_s11 = sphi %s1232_s11, %s1489_s11   ;;  %s1189_s10 = sphi %s1230_s10, %s1488_s10   ;;  %s1185_s9 = sphi %s1228_s9, %s1487_s9  }
   0x8   : > { %s64_s17 = sadd.s32 1, %s1193_s11  ;;  %p71_p0 = scmp.ne.s32.totalorder %s1193_s11, %s1189_s10 }
   0x9   : > { %p72_p1 = scmp.eq.s32.totalorder %s1205_s14, 0  ;;  %p77_p2 = scmp.ne.s32.totalorder %s1189_s10, %s1185_s9 }
   0xa   : > { %p1266_p3 = scmp.eq.s32.totalorder %s802_s15, 0  ;;  %p103_p4 = scmp.eq.s32.totalorder %s802_s15, 1 }
   0xb   : > { %p1270_p5 = por %p72_p1, %p71_p0  ;;  %p109_p6 = scmp.eq.s32.totalorder %s803_s16, 1 }
   0xc   : > { %p1276_p7 = por %p1266_p3, %p77_p2  ;;  %p1280_p8 = por %p103_p4, %p71_p0 }
   0xd   : > { %p1284_p9 = por %p109_p6, %p77_p2  ;;  %p804_p10 = scmp.ge.s32.totalorder %s1205_s14, 1 }
   0xe   : > { %s1477_s20 = scalar_select %p1276_p7, 1, 0 }
   0xf   : > { %s1478_s21 = scalar_select %p1280_p8, 1, 0 }
  0x10   : > { %s1479_s22 = scalar_select %p1284_p9, 1, 0 }
  0x11   : > { %p116_p11 = scmp.lt.s32.totalorder %s1205_s14, 3  ;;  %s1207_s24 = smov [#allocation2]  }
  0x12   : > { %s132_s25 = sshll.u32 %s1207_s24, 4  ;;  %p912_p1 = scmp.lt.s32.totalorder %s1205_s14, 2  ;;  %s133_s25 = int_to_ptr.vmem [resolvable:$true] %s132_s25 }
  0x13   : > { %p1291_p13 = pnand %p804_p10, %p116_p11  ;;  %s28_s28 = sadd.s32 1, %s1201_s13 }
  0x14   : > { %p1300_p4 = pnand %p912_p1, %p1270_p5  ;;  %p29_p6 = scmp.ge.s32.totalorder %s28_s28, 2 }
  0x15   : > { %p899_p0 = pneg %p1291_p13  ;;  %s143_s29 = sand.u32 1, %s1193_s11  }
  0x16   : > { %s1078_s30 = scalar_lea.vmem %s133_s25, 256  ;;  %p1086_p8 = scmp.lt.s32.totalorder %s133_s25, %s133_s25 }
  0x17   : > { %p1306_p2 = pnand %p899_p0, %p1266_p3  ;;  %p1079_p11 = scmp.ne.s32.totalorder %s133_s25, %s1078_s30 }
  0x18   : > { %p1087_p5 = scmp.lt.s32.totalorder %s1078_s30, %s1078_s30 }
  0x19   : > { %p1069_p10 = pneg %p1306_p2 }
  0x1a   : > { %p1088_p1 = por %p1087_p5, %p1086_p8 }
  0x1b   : > { %p1081_p12 = pnand %p1079_p11, %p1069_p10 }
  0x1d   : > { %p1082_p9 = pneg %p1081_p12 }
  0x1f   : > { %p1089_p7 = pnand %p1088_p1, %p1082_p9 }
  0x21   : > { %1092 = shalt.err (!%p1089_p7)
}
  0x22   : > { %902 = dma.hbm_to_vmem [thread:$0]  (!%p1306_p2), %s1470_s0, 256, %s133_s25, [#allocation3]  }
  0x23   : > { %s1493_s28 = smov (%p29_p6, %s28_s28), 0  ;;  %s807_s5 = sshll.u32 %s143_s29, 9 }
  0x24   : > { %s61_s6 = ssub.s32 %s1201_s13, %s1493_s28  ;;  %s888_s7 = sshll.u32 %s1201_s13, 7 }
  0x25   : > { %p62_p12 = scmp.eq.s32.totalorder %s61_s6, 0  ;;  %s153_s16 = scalar_lea.hbm %s1471_s1, %s888_s7 }
  0x26   : > { %s147_s19 = scalar_lea.vmem [#allocation5], %s807_s5  ;;  %s144_s30 = scalar_lea.sflag [#allocation6], %s143_s29 }
  0x27   : > { %s154_s24 = sshll.u32 %s147_s19, 4  ;;  %p1095_p7 = pneg %p1300_p4  ;;  %s155_s24 = int_to_ptr.vmem [resolvable:$true] %s154_s24 }
  0x28   : > { %s1330_s27 = scalar_select %p62_p12, %s1193_s11, %s64_s17  }
  0x29   : > { %s1106_s25 = scalar_lea.vmem %s155_s24, 8192  ;;  %s1208_s3 = smov [#allocation5]  }
  0x2a   : > { %p1107_p8 = scmp.ne.s32.totalorder %s155_s24, %s1106_s25  ;;  %s1111_s4 = sshll.u32 %s1208_s3, 4  ;;  %s1112_s4 = int_to_ptr.vmem [resolvable:$false] %s1111_s4 }
  0x2b   : > { %s1113_s6 = scalar_lea.vmem %s1112_s4, 16384  ;;  %p1114_p2 = scmp.lt.s32.totalorder %s155_s24, %s1112_s4 }
  0x2c   : > { %p1109_p9 = pnand %p1107_p8, %p1095_p7  ;;  %p1115_p6 = scmp.lt.s32.totalorder %s1113_s6, %s1106_s25 }
  0x2e   : > { %p1110_p0 = pneg %p1109_p9  ;;  %p1116_p10 = por %p1115_p6, %p1114_p2 }
  0x30   : > { %p1117_p11 = pnand %p1116_p10, %p1110_p0 }
  0x32   : > { %1120 = shalt.err (!%p1117_p11)
}
  0x33   : > { %s1209_s5 = smov 256   ;;  %s1210_s17 = smov 128  }
  0x34   : > { %s1211_s7 = smov 8   ;;  %166 = sbr.rel (%p1291_p13) target bundleno = 340 (0x154), region = 28 }
  0x35   : > { %906 = dma.hbm_to_vmem [thread:$0]  (!%p1300_p4), %s153_s16, 8192, %s155_s24, %s144_s30, %s1209_s5, %s1210_s17, %s1211_s7  }
  0x39   : > { %1172 = dma.done.wait (%p1266_p3), [#allocation3], 256  }
  0x3a   : > { %1174 = vsyncadd (%p1266_p3), [#allocation3], 4294967040  ;;  %s1343_s29 = sand.u32 1, %s1189_s10   ;;  %p1483_p4 = scmp.ne.s32.totalorder %s1477_s20, 0 }
  0x3b   : > { %s812_s8 = sshll.u32 %s1343_s29, 9  ;;  %s173_s15 = scalar_lea.sflag [#allocation6], %s1343_s29 }
  0x3c   : > { %s1347_s19 = scalar_lea.vmem [#allocation5], %s812_s8 }
  0x3d   : > { %1176 = dma.done.wait (%p1483_p4), %s173_s15, 8192  }
  0x3e   : > { %1178 = vsyncadd (%p1483_p4), %s173_s15, 4294959104  ;;  %v967_v0 = vld [vmem:[%s1347_s19 + $0x74] ss:$8 sps:$4 sm:$0xff]   ;;  %v971_v2 = vld [vmem:[%s1347_s19 + $0x70] ss:$8 sps:$4 sm:$0xff]   ;;  %s813_s18 = sshll.u32 %s1343_s29, 3 }
  0x3f   : > { %v969_v1 = vld [vmem:[%s1347_s19 + $0x174] ss:$8 sps:$4 sm:$0xff]   ;;  %599 = vmatprep.subr.bf16.mxu0 %v967_v0  ;;  %v972_v3 = vld [vmem:[%s1347_s19 + $0x170] ss:$8 sps:$4 sm:$0xff]   ;;  %v973_v4 = vld [vmem:[%s1347_s19 + $0x64] ss:$8 sps:$4 sm:$0xff]  }
  0x40   : > { %640 = vmatprep.subr.bf16.mxu1 %v969_v1  ;;  %600 = vmatpush1.bf16.msra.mxu0 %v971_v2  ;;  %v975_v5 = vld [vmem:[%s1347_s19 + $0x164] ss:$8 sps:$4 sm:$0xff]   ;;  %v977_v6 = vld [vmem:[%s1347_s19 + $0x60] ss:$8 sps:$4 sm:$0xff]   ;;  %v979_v8 = vld [vmem:[%s1347_s19 + $0x54] ss:$8 sps:$4 sm:$0xff]  }
  0x41   : > { %641 = vmatpush1.bf16.msra.mxu1 %v972_v3  ;;  %601 = vmatprep.subr.bf16.mxu0 %v973_v4  ;;  %v978_v7 = vld [vmem:[%s1347_s19 + $0x160] ss:$8 sps:$4 sm:$0xff]   ;;  %v981_v9 = vld [vmem:[%s1347_s19 + $0x154] ss:$8 sps:$4 sm:$0xff]   ;;  %v983_v10 = vld [vmem:[%s1347_s19 + $0x50] ss:$8 sps:$4 sm:$0xff]  }
  0x42   : > { %642 = vmatprep.subr.bf16.mxu1 %v975_v5  ;;  %v984_v11 = vld [vmem:[%s1347_s19 + $0x150] ss:$8 sps:$4 sm:$0xff]   ;;  %v985_v12 = vld [vmem:[%s1347_s19 + $0x44] ss:$8 sps:$4 sm:$0xff]   ;;  %v989_v14 = vld [vmem:[%s1347_s19 + $0x40] ss:$8 sps:$4 sm:$0xff]  }
  0x43   : > { %v987_v13 = vld [vmem:[%s1347_s19 + $0x144] ss:$8 sps:$4 sm:$0xff]   ;;  %v990_v15 = vld [vmem:[%s1347_s19 + $0x140] ss:$8 sps:$4 sm:$0xff]   ;;  %v991_v16 = vld [vmem:[%s1347_s19 + $0x34] ss:$8 sps:$4 sm:$0xff]  }
  0x44   : > { %602 = vmatpush1.bf16.msra.mxu0 %v977_v6  ;;  %v993_v17 = vld [vmem:[%s1347_s19 + $0x134] ss:$8 sps:$4 sm:$0xff]   ;;  %v995_v18 = vld [vmem:[%s1347_s19 + $0x30] ss:$8 sps:$4 sm:$0xff]   ;;  %v997_v20 = vld [vmem:[%s1347_s19 + $0x24] ss:$8 sps:$4 sm:$0xff]  }
  0x45   : > { %643 = vmatpush1.bf16.msra.mxu1 %v978_v7  ;;  %603 = vmatprep.subr.bf16.mxu0 %v979_v8  ;;  %v996_v19 = vld [vmem:[%s1347_s19 + $0x130] ss:$8 sps:$4 sm:$0xff]   ;;  %v999_v21 = vld [vmem:[%s1347_s19 + $0x124] ss:$8 sps:$4 sm:$0xff]   ;;  %v1001_v22 = vld [vmem:[%s1347_s19 + $0x20] ss:$8 sps:$4 sm:$0xff]  }
  0x46   : > { %644 = vmatprep.subr.bf16.mxu1 %v981_v9  ;;  %v1002_v23 = vld [vmem:[%s1347_s19 + $0x120] ss:$8 sps:$4 sm:$0xff]   ;;  %v1003_v24 = vld [vmem:[%s1347_s19 + $0x14] ss:$8 sps:$4 sm:$0xff]   ;;  %v1007_v26 = vld [vmem:[%s1347_s19 + $0x10] ss:$8 sps:$4 sm:$0xff]  }
  0x47   : > { %v1005_v25 = vld [vmem:[%s1347_s19 + $0x114] ss:$8 sps:$4 sm:$0xff]   ;;  %v1008_v27 = vld [vmem:[%s1347_s19 + $0x110] ss:$8 sps:$4 sm:$0xff]   ;;  %v1009_v28 = vld [vmem:[%s1347_s19 + $0x4] ss:$8 sps:$4 sm:$0xff]  }
  0x48   : > { %604 = vmatpush1.bf16.msra.mxu0 %v983_v10  ;;  %v1011_v29 = vld [vmem:[%s1347_s19 + $0x104] ss:$8 sps:$4 sm:$0xff]   ;;  %v1013_v30 = vld [vmem:[%s1347_s19] ss:$8 sps:$4 sm:$0xff]   ;;  %v1015_v32 = vld [vmem:[%s1347_s19 + $0xf4] ss:$8 sps:$4 sm:$0xff]  }
  0x49   : > { %645 = vmatpush1.bf16.msra.mxu1 %v984_v11  ;;  %605 = vmatprep.subr.bf16.mxu0 %v985_v12  ;;  %v1014_v31 = vld [vmem:[%s1347_s19 + $0x100] ss:$8 sps:$4 sm:$0xff]   ;;  %v1017_v33 = vld [vmem:[%s1347_s19 + $0x1f4] ss:$8 sps:$4 sm:$0xff]   ;;  %v1019_v34 = vld [vmem:[%s1347_s19 + $0xf0] ss:$8 sps:$4 sm:$0xff]  }
  0x4a   : > { %646 = vmatprep.subr.bf16.mxu1 %v987_v13  ;;  %v1020_v35 = vld [vmem:[%s1347_s19 + $0x1f0] ss:$8 sps:$4 sm:$0xff]   ;;  %v1021_v36 = vld [vmem:[%s1347_s19 + $0xe4] ss:$8 sps:$4 sm:$0xff]   ;;  %v1025_v38 = vld [vmem:[%s1347_s19 + $0xe0] ss:$8 sps:$4 sm:$0xff]  }
  0x4b   : > { %v1023_v37 = vld [vmem:[%s1347_s19 + $0x1e4] ss:$8 sps:$4 sm:$0xff]   ;;  %v1026_v39 = vld [vmem:[%s1347_s19 + $0x1e0] ss:$8 sps:$4 sm:$0xff]   ;;  %v1027_v40 = vld [vmem:[%s1347_s19 + $0xd4] ss:$8 sps:$4 sm:$0xff]  }
  0x4c   : > { %606 = vmatpush1.bf16.msra.mxu0 %v989_v14  ;;  %v1029_v41 = vld [vmem:[%s1347_s19 + $0x1d4] ss:$8 sps:$4 sm:$0xff]   ;;  %v1031_v42 = vld [vmem:[%s1347_s19 + $0xd0] ss:$8 sps:$4 sm:$0xff]   ;;  %v1033_v44 = vld [vmem:[%s1347_s19 + $0xc4] ss:$8 sps:$4 sm:$0xff]  }
  0x4d   : > { %647 = vmatpush1.bf16.msra.mxu1 %v990_v15  ;;  %607 = vmatprep.subr.bf16.mxu0 %v991_v16  ;;  %v1032_v43 = vld [vmem:[%s1347_s19 + $0x1d0] ss:$8 sps:$4 sm:$0xff]   ;;  %v1035_v45 = vld [vmem:[%s1347_s19 + $0x1c4] ss:$8 sps:$4 sm:$0xff]   ;;  %v1037_v49 = vld [vmem:[%s1347_s19 + $0xc0] ss:$8 sps:$4 sm:$0xff]  }
  0x4e   : > { %648 = vmatprep.subr.bf16.mxu1 %v993_v17  ;;  %v199_v46 = vld [vmem:[#allocation2] sm:$0xff]  ;;  %v200_v48 = vld [vmem:[#allocation2 + $0x8] sm:$0xff]  ;;  %v1038_v50 = vld [vmem:[%s1347_s19 + $0x1c0] ss:$8 sps:$4 sm:$0xff]   ;;  %s890_s20 = sshll.u32 %s1197_s12, 7  ;;  %s196_s23 = scalar_lea.vmem [#allocation7], %s813_s18 }
  0x4f   : > { %v815_v47 = vcombine.high %v199_v46, %v199_v46  ;;  %v817_v51 = vcombine.high %v200_v48, %v200_v48  ;;  %v1039_v52 = vld [vmem:[%s1347_s19 + $0xb4] ss:$8 sps:$4 sm:$0xff]   ;;  %v1043_v54 = vld [vmem:[%s1347_s19 + $0xb0] ss:$8 sps:$4 sm:$0xff]   ;;  %v1045_v56 = vld [vmem:[%s1347_s19 + $0xa4] ss:$8 sps:$4 sm:$0xff]   ;;  %v814_v4 = vcombine.low %v199_v46, %v199_v46  ;;  %v816_v5 = vcombine.low %v200_v48, %v200_v48  ;;  %s1422_s30 = scalar_lea.hbm %s1472_s2, %s890_s20 }
  0x50   : > { %608 = vmatpush1.bf16.msra.mxu0 %v995_v18  ;;  %v1041_v53 = vld [vmem:[%s1347_s19 + $0x1b4] ss:$8 sps:$4 sm:$0xff]   ;;  %v1044_v55 = vld [vmem:[%s1347_s19 + $0x1b0] ss:$8 sps:$4 sm:$0xff]   ;;  %v1047_v57 = vld [vmem:[%s1347_s19 + $0x1a4] ss:$8 sps:$4 sm:$0xff]  }
  0x51   : > { %649 = vmatpush1.bf16.msra.mxu1 %v996_v19  ;;  %609 = vmatprep.subr.bf16.mxu0 %v997_v20  ;;  %v1049_v58 = vld [vmem:[%s1347_s19 + $0xa0] ss:$8 sps:$4 sm:$0xff]   ;;  %v1051_v60 = vld [vmem:[%s1347_s19 + $0x94] ss:$8 sps:$4 sm:$0xff]   ;;  %v1055_v62 = vld [vmem:[%s1347_s19 + $0x90] ss:$8 sps:$4 sm:$0xff]  }
  0x52   : > { %650 = vmatprep.subr.bf16.mxu1 %v999_v21  ;;  %631 = vmatprep.mubr.bf16.mxu0 %v815_v47  ;;  %v1050_v59 = vld [vmem:[%s1347_s19 + $0x1a0] ss:$8 sps:$4 sm:$0xff]   ;;  %v1053_v61 = vld [vmem:[%s1347_s19 + $0x194] ss:$8 sps:$4 sm:$0xff]   ;;  %v1056_v63 = vld [vmem:[%s1347_s19 + $0x190] ss:$8 sps:$4 sm:$0xff]  }
  0x53   : > { %672 = vmatprep.mubr.bf16.mxu1 %v817_v51  ;;  %v1057_v0 = vld [vmem:[%s1347_s19 + $0x84] ss:$8 sps:$4 sm:$0xff]   ;;  %v1061_v2 = vld [vmem:[%s1347_s19 + $0x80] ss:$8 sps:$4 sm:$0xff]   ;;  %s707_s26 = sshll.u32 %s196_s23, 4  ;;  %s691_s12 = scalar_lea.sflag [#allocation4], %s1343_s29  ;;  %s1424_s26 = int_to_ptr.vmem [resolvable:$true] %s707_s26 }
  0x54   : > { %610 = vmatpush1.bf16.msra.mxu0 %v1001_v22  ;;  %v1059_v1 = vld [vmem:[%s1347_s19 + $0x184] ss:$8 sps:$4 sm:$0xff]   ;;  %v1062_v3 = vld [vmem:[%s1347_s19 + $0x180] ss:$8 sps:$4 sm:$0xff]   ;;  %s1121_s25 = scalar_lea.vmem %s1424_s26, 128  ;;  %p1484_p13 = scmp.ne.s32.totalorder %s1478_s21, 0 }
  0x55   : > { %651 = vmatpush1.bf16.msra.mxu1 %v1002_v23  ;;  %611 = vmatprep.subr.bf16.mxu0 %v1003_v24  ;;  %p1122_p3 = scmp.ne.s32.totalorder %s1424_s26, %s1121_s25  ;;  %s1212_s3 = smov [#allocation7]  }
  0x56   : > { %652 = vmatprep.subr.bf16.mxu1 %v1005_v25  ;;  %s1125_s4 = sshll.u32 %s1212_s3, 4  ;;  %s1126_s4 = int_to_ptr.vmem [resolvable:$false] %s1125_s4 }
  0x57   : > { %p1123_p5 = pnand %p1122_p3, %p1484_p13  ;;  %s1127_s6 = scalar_lea.vmem %s1126_s4, 256 }
  0x58   : > { %612 = vmatpush1.bf16.msra.mxu0 %v1007_v26  ;;  %p1128_p12 = scmp.lt.s32.totalorder %s1424_s26, %s1126_s4  ;;  %p1129_p7 = scmp.lt.s32.totalorder %s1127_s6, %s1121_s25 }
  0x59   : > { %653 = vmatpush1.bf16.msra.mxu1 %v1008_v27  ;;  %613 = vmatprep.subr.bf16.mxu0 %v1009_v28  ;;  %p1124_p1 = pneg %p1123_p5 }
  0x5a   : > { %654 = vmatprep.subr.bf16.mxu1 %v1011_v29  ;;  %p1130_p8 = por %p1129_p7, %p1128_p12 }
  0x5c   : > { %614 = vmatpush1.bf16.msra.mxu0 %v1013_v30  ;;  %p1131_p9 = pnand %p1130_p8, %p1124_p1 }
  0x5d   : > { %655 = vmatpush1.bf16.msra.mxu1 %v1014_v31  ;;  %615 = vmatprep.subr.bf16.mxu0 %v1015_v32 }
  0x5e   : > { %656 = vmatprep.subr.bf16.mxu1 %v1017_v33 }
  0x60   : > { %616 = vmatpush2.bf16.msra.mxu0 %v1019_v34 }
  0x61   : > { %657 = vmatpush2.bf16.msra.mxu1 %v1020_v35  ;;  %617 = vmatprep.subr.bf16.mxu0 %v1021_v36 }
  0x62   : > { %658 = vmatprep.subr.bf16.mxu1 %v1023_v37 }
  0x64   : > { %618 = vmatpush2.bf16.msra.mxu0 %v1025_v38 }
  0x65   : > { %659 = vmatpush2.bf16.msra.mxu1 %v1026_v39  ;;  %619 = vmatprep.subr.bf16.mxu0 %v1027_v40 }
  0x66   : > { %660 = vmatprep.subr.bf16.mxu1 %v1029_v41 }
  0x68   : > { %620 = vmatpush2.bf16.msra.mxu0 %v1031_v42 }
  0x69   : > { %661 = vmatpush2.bf16.msra.mxu1 %v1032_v43  ;;  %621 = vmatprep.subr.bf16.mxu0 %v1033_v44 }
  0x6a   : > { %662 = vmatprep.subr.bf16.mxu1 %v1035_v45 }
  0x6c   : > { %622 = vmatpush2.bf16.msra.mxu0 %v1037_v49 }
  0x6d   : > { %663 = vmatpush2.bf16.msra.mxu1 %v1038_v50  ;;  %623 = vmatprep.subr.bf16.mxu0 %v1039_v52 }
  0x6e   : > { %664 = vmatprep.subr.bf16.mxu1 %v1041_v53 }
  0x70   : > { %624 = vmatpush2.bf16.msra.mxu0 %v1043_v54 }
  0x71   : > { %665 = vmatpush2.bf16.msra.mxu1 %v1044_v55  ;;  %625 = vmatprep.subr.bf16.mxu0 %v1045_v56 }
  0x72   : > { %666 = vmatprep.subr.bf16.mxu1 %v1047_v57 }
  0x74   : > { %626 = vmatpush2.bf16.msra.mxu0 %v1049_v58 }
  0x75   : > { %667 = vmatpush2.bf16.msra.mxu1 %v1050_v59  ;;  %627 = vmatprep.subr.bf16.mxu0 %v1051_v60 }
  0x76   : > { %668 = vmatprep.subr.bf16.mxu1 %v1053_v61 }
  0x78   : > { %628 = vmatpush2.bf16.msra.mxu0 %v1055_v62 }
  0x79   : > { %669 = vmatpush2.bf16.msra.mxu1 %v1056_v63  ;;  %629 = vmatprep.subr.bf16.mxu0 %v1057_v0 }
  0x7a   : > { %670 = vmatprep.subr.bf16.mxu1 %v1059_v1 }
  0x7c   : > { %630 = vmatpush2.bf16.msra.mxu0 %v1061_v2 }
  0x7d   : > { %671 = vmatpush2.bf16.msra.mxu1 %v1062_v3 }
  0x7f   : > { %632 = vmatmul.mubr.bf16.vlgmr.msra.gmra.mxu0 %v814_v4 }
  0x80   : > { %673 = vmatmul.mubr.bf16.vlgmr.msra.gmra.mxu1 %v816_v5 }
 0x13f   : > { %v633_v6 = vpop.f32.mrf.mxu0 }
 0x140   : > { %v674_v7 = vpop.f32.mrf.mxu1 }
 0x141   : > { %v635_v8 = vpop.f32.mrf.mxu0  ;;  %v675_v10 = vadd.f32 %v674_v7, %v633_v6 }
 0x142   : > { %v676_v9 = vpop.f32.mrf.mxu1 }
 0x143   : > { %v677_v11 = vadd.f32 %v676_v9, %v635_v8  ;;  %v637_v12 = vpop.f32.mrf.mxu0 }
 0x144   : > { %v678_v13 = vpop.f32.mrf.mxu1 }
 0x145   : > { %v889_v14 = vpack.c.bf16 %v677_v11, %v675_v10  ;;  %v638_v15 = vpop.f32.mrf.mxu0 }
 0x146   : > { %v679_v16 = vpop.f32.mrf.mxu1 }
 0x147   : > { %689 = vst [vmem:[%s196_s23] sm:$0xff] %v889_v14 }
 0x148   : > { %1134 = shalt.err (!%p1131_p9)
}
 0x149   : > { %s1135_s5 = scalar_lea.hbm %s1422_s30, 128  ;;  %s1139_s29 = scalar_lea.hbm %s1472_s2, 256 }
 0x14a   : > { %p1136_p0 = scmp.ne.s32.totalorder %s1422_s30, %s1135_s5  ;;  %p1140_p10 = scmp.lt.s32.totalorder %s1422_s30, %s1472_s2 }
 0x14b   : > { %p1141_p11 = scmp.lt.s32.totalorder %s1139_s29, %s1135_s5 }
 0x14c   : > { %p1137_p2 = pnand %p1136_p0, %p1484_p13 }
 0x14d   : > { %p1142_p4 = por %p1141_p11, %p1140_p10 }
 0x14e   : > { %p1138_p6 = pneg %p1137_p2 }
 0x150   : > { %p1143_p3 = pnand %p1142_p4, %p1138_p6 }
 0x152   : > { %1146 = shalt.err (!%p1143_p3)
}
 0x153   : > { %897 = dma.vmem_to_hbm [thread:$0]  (%p1484_p13), %s1424_s26, 128, %s1422_s30, %s691_s12  }
 0x154 PF: > { %s719_s19 = sand.u32 1, %s1185_s9   ;;  %p1485_p5 = scmp.ne.s32.totalorder %s1479_s22, 0 }
 0x155   : > { %p1486_p1 = scmp.ge.s32.totalorder %s1205_s14, 2  ;;  %s720_s18 = scalar_lea.sflag [#allocation4], %s719_s19 }
 0x157   : > { %p908_p12 = pnand %p1486_p1, %p1485_p5 }
 0x159   : > { %p909_p7 = pneg %p908_p12 }
 0x15b   : > { %1180 = dma.done.wait (%p909_p7), %s720_s18, 128  }
 0x15c   : > { %1182 = vsyncadd (%p909_p7), %s720_s18, 4294967168  ;;  %s19_s14 = sadd.s32 1, %s1205_s14   ;;  %s1487_s9 = smov %s1189_s10 }
 0x15d   : > { %p16_p8 = scmp.ge.s32.totalorder %s19_s14, 4   ;;  %s1488_s10 = smov %s1193_s11 }
 0x15e   : > { %s1489_s11 = smov %s1330_s27  ;;  %s1490_s12 = smov %s1201_s13 }
 0x15f   : > { %s1491_s13 = smov %s1493_s28  ;;  %18 = sbr.rel (!%p16_p8) target bundleno = 7 (0x7), region = 79 }
 0x164   :  { %725 = vsyncpa [#allocation3], 1 }
 0x165   :  { %727 = vsyncpa [#allocation3 + $0x1], 1 }
 0x166   :  { %728 = vsyncpa [#allocation6], 1 }
 0x167   :  { %730 = vsyncpa [#allocation6 + $0x1], 1 }
 0x168   :  { %731 = vsyncpa [#allocation4], 1 }
 0x169   :  { %733 = vsyncpa [#allocation4 + $0x1], 1 }

</bundles_post_ra>
